<compile_context>
chip_gen: v5e
topology: v5e:2x2
jax: 0.10.0
libtpu: 0.0.40
codegen_flags: <defaults>
</compile_context>

<pallas_src>
import jax
import jax.numpy as jnp
import numpy as np
from jax.experimental import pallas as pl
from jax.experimental.pallas import tpu as pltpu


def _round_up(x, m):
    return (x + m - 1) // m * m


def memory_kernel(tgt_ref, table_ref, out_ref):
    """One fused matmul: multi-hot [Rblk, Kpad] @ table [Kpad, Npad]."""
    targets = tgt_ref[...]                  # [Rblk, S+1] int32 column targets
    Rblk = targets.shape[0]
    S1 = targets.shape[1]
    Kpad = table_ref.shape[0]

    col = jax.lax.broadcasted_iota(jnp.int32, (Rblk, Kpad), 1)

    # S+1 compares (static unroll) build the multi-hot row; targets are
    # guaranteed distinct per row (s*V offsets) so plain addition is exact.
    hot = jnp.zeros((Rblk, Kpad), jnp.float32)
    for s in range(S1):
        hot = hot + (col == targets[:, s:s + 1]).astype(jnp.float32)

    out_ref[...] = jnp.dot(hot, table_ref[...],
                           preferred_element_type=jnp.float32)


def prepare_memory_table(A, C, TA, TC, pos_enc):
    """Build the fused [Kpad, Npad] lookup table (hoist out of the hot path).

    Rows:
      s*V + v -> [ A[v]*pos[s] | C[v]*pos[s] | A[v]*pos[s] | C[v]*pos[s] ]
      S*V + t -> [ TA[t]       | TC[t]       | 0           | 0           ]
    Columns (before Npad padding): [ m+TA | c+TC | m | c ], D each.
    """
    V, D = A.shape
    S = pos_enc.shape[0]
    T = TA.shape[0]

    AC = jnp.concatenate([A, C], axis=1).astype(jnp.float32)          # [V, 2D]
    pos2 = jnp.concatenate([pos_enc, pos_enc], axis=1).astype(jnp.float32)
    W = (AC[None, :, :] * pos2[:, None, :]).reshape(S * V, 2 * D)     # [S*V, 2D]
    Wtok = jnp.concatenate([W, W], axis=1)                            # [S*V, 4D]
    temporal = jnp.concatenate(
        [TA.astype(jnp.float32), TC.astype(jnp.float32),
         jnp.zeros((T, D), jnp.float32), jnp.zeros((T, D), jnp.float32)],
        axis=1)                                                       # [T, 4D]
    table = jnp.concatenate([Wtok, temporal], axis=0)                 # [K, 4D]

    K = S * V + T
    Kpad = _round_up(K, 128)
    Npad = _round_up(4 * D, 128)
    table = jnp.pad(table, ((0, Kpad - K), (0, Npad - 4 * D)))
    return table


def memory_forward(ctx, time, table, *, vocab_size, memory_dim, memory_size):
    B, M, S = ctx.shape
    D = memory_dim
    V = vocab_size
    T = memory_size
    Kpad, Npad = table.shape
    S1 = S + 1
    R_total = B * M

    # ---- target column ids (cheap XLA prep; keeps kernel layout-clean) ----
    base = (jnp.arange(S, dtype=jnp.int32) * V)[None, None, :]
    ctx_i = ctx.astype(jnp.int32)
    tok_cols = jnp.where((ctx_i >= 0) & (ctx_i < V), ctx_i + base, Kpad)
    tok_cols = tok_cols.reshape(R_total, S)
    time_i = time.astype(jnp.int32).reshape(R_total, 1)
    time_col = jnp.where((time_i >= 0) & (time_i < T), time_i + S * V, Kpad)
    targets = jnp.concatenate([tok_cols, time_col], axis=1)           # [R, S+1]

    # ---- VMEM-budgeted row tiling -----------------------------------------
    table_bytes = 2 * Kpad * Npad * 4            # resident, double-buffered
    per_row = Kpad * 4 + 2 * Npad * 4 + 2 * 128 * 4
    budget = 8 * 1024 * 1024                     # conservative for v7x
    avail = max(budget - table_bytes, 0)
    max_rblk = max(8, (avail // per_row) // 8 * 8)
    Rblk = min(_round_up(R_total, 8), max_rblk)
    R_pad = _round_up(R_total, Rblk)
    nblk = R_pad // Rblk

    if R_pad > R_total:
        # Column id Kpad never matches the iota -> padded rows come out zero.
        pad_rows = jnp.full((R_pad - R_total, S1), Kpad, jnp.int32)
        targets = jnp.concatenate([targets, pad_rows], axis=0)

    out = pl.pallas_call(
        memory_kernel,
        out_shape=jax.ShapeDtypeStruct((R_pad, Npad), jnp.float32),
        grid_spec=pltpu.PrefetchScalarGridSpec(
            num_scalar_prefetch=0,
            grid=(nblk,),
            in_specs=[
                pl.BlockSpec((Rblk, S1), lambda g: (g, 0)),      # targets block
                pl.BlockSpec((Kpad, Npad), lambda g: (0, 0)),    # fused table
            ],
            out_specs=pl.BlockSpec((Rblk, Npad), lambda g: (g, 0)),
        ),
        compiler_params=pltpu.CompilerParams(
            dimension_semantics=("parallel",)),
    )(targets, table)

    out = out[:R_total, :4 * D]
    ma_t = out[:, 0 * D:1 * D].reshape(B, M, D)
    mc_t = out[:, 1 * D:2 * D].reshape(B, M, D)
    ma = out[:, 2 * D:3 * D].reshape(B, M, D)
    mc = out[:, 3 * D:4 * D].reshape(B, M, D)

    # matches torch forward: ((m + TA[time], m), (c + TC[time], c))
    return (ma_t, ma), (mc_t, mc)


def babi_position_encoding(max_sent_len, memory_dim):
    # Standard MemN2N position encoding.
    J, d = max_sent_len, memory_dim
    j = np.arange(1, J + 1)[:, None].astype(np.float32)
    k = np.arange(1, d + 1)[None, :].astype(np.float32)
    pe = (1.0 - j / J) - (k / d) * (1.0 - 2.0 * j / J)
    return jnp.asarray(pe, dtype=jnp.float32)


def reference_forward(ctx, time, A, C, TA, TC, pos_enc):
    def one(table, temp):
        m = table[ctx]                         # [B, M, S, D]
        m = (m * pos_enc[None, None]).sum(2)   # [B, M, D]
        return m + temp[time], m
    return one(A, TA), one(C, TC)


if __name__ == "__main__":
    # Small synthetic configuration consistent with the module.
    batch = 2
    memory_size = 8      # number of memory slots (sentences kept)
    max_sent_len = 8
    memory_dim = 32
    vocab_size = 32

    key = jax.random.PRNGKey(0)
    k_a, k_c, k_ta, k_tc, k_ctx, k_time = jax.random.split(key, 6)

    A = jax.random.normal(k_a, (vocab_size, memory_dim), jnp.float32) * 0.1
    C = jax.random.normal(k_c, (vocab_size, memory_dim), jnp.float32) * 0.1
    TA = jax.random.normal(k_ta, (memory_size, memory_dim), jnp.float32) * 0.1
    TC = jax.random.normal(k_tc, (memory_size, memory_dim), jnp.float32) * 0.1
    pos_enc = babi_position_encoding(max_sent_len, memory_dim)

    ctx = jax.random.randint(k_ctx, (batch, memory_size, max_sent_len),
                             0, vocab_size, dtype=jnp.int32)
    time = jax.random.randint(k_time, (batch, memory_size),
                              0, memory_size, dtype=jnp.int32)

    # Table prep is hoisted out of the forward path (stored-parameter style).
    table = prepare_memory_table(A, C, TA, TC, pos_enc)
    table = jax.block_until_ready(table)

    (ma_t, ma), (mc_t, mc) = memory_forward(
        ctx, time, table,
        vocab_size=vocab_size, memory_dim=memory_dim, memory_size=memory_size)
    jax.block_until_ready((ma_t, ma, mc_t, mc))

    (ra_t, ra), (rc_t, rc) = reference_forward(ctx, time, A, C, TA, TC, pos_enc)
    np.testing.assert_allclose(np.asarray(ma_t), np.asarray(ra_t), rtol=1e-5, atol=1e-5)
    np.testing.assert_allclose(np.asarray(ma),   np.asarray(ra),   rtol=1e-5, atol=1e-5)
    np.testing.assert_allclose(np.asarray(mc_t), np.asarray(rc_t), rtol=1e-5, atol=1e-5)
    np.testing.assert_allclose(np.asarray(mc),   np.asarray(rc),   rtol=1e-5, atol=1e-5)

    print("KERNEL_OK")
</pallas_src>

<mosaic_0001>
module attributes {stable_mosaic.version = 11 : i64} {
  func.func @memory_kernel(%arg0: i32, %arg1: memref<16x9xi32, #tpu.memory_space<vmem>>, %arg2: memref<384x128xf32, #tpu.memory_space<vmem>>, %arg3: memref<16x128xf32, #tpu.memory_space<vmem>>) attributes {dimension_semantics = [#tpu.dimension_semantics<parallel>], iteration_bounds = array<i64: 1>, scalar_prefetch = 0 : i64, scratch_operands = 0 : i64, tpu.core_type = #tpu.core_type<tc>, window_params = [{transform_indices = @transform_0, window_bounds = array<i64: 16, 9>}, {pipeline_mode = #tpu.pipeline_mode<synchronous>, transform_indices = @transform_1, window_bounds = array<i64: 384, 128>}, {transform_indices = @transform_2, window_bounds = array<i64: 16, 128>}]} {
    %c0 = arith.constant 0 : index
    %c0_0 = arith.constant 0 : index
    %0 = vector.load %arg1[%c0, %c0_0] : memref<16x9xi32, #tpu.memory_space<vmem>>, vector<16x9xi32>
    %1 = tpu.iota {dimensions = array<i32: 1>} : vector<16x384xi32>
    %cst = arith.constant 0.000000e+00 : f32
    %2 = vector.broadcast %cst : f32 to vector<16x384xf32>
    %3 = vector.extract_strided_slice %0 {offsets = [0, 0], sizes = [16, 1], strides = [1, 1]} : vector<16x9xi32> to vector<16x1xi32>
    %4 = vector.broadcast %3 : vector<16x1xi32> to vector<16x384xi32>
    %5 = arith.cmpi eq, %1, %4 : vector<16x384xi32>
    %6 = arith.extui %5 : vector<16x384xi1> to vector<16x384xi32>
    %7 = arith.sitofp %6 : vector<16x384xi32> to vector<16x384xf32>
    %8 = arith.addf %2, %7 : vector<16x384xf32>
    %9 = vector.extract_strided_slice %0 {offsets = [0, 1], sizes = [16, 1], strides = [1, 1]} : vector<16x9xi32> to vector<16x1xi32>
    %10 = vector.broadcast %9 : vector<16x1xi32> to vector<16x384xi32>
    %11 = arith.cmpi eq, %1, %10 : vector<16x384xi32>
    %12 = arith.extui %11 : vector<16x384xi1> to vector<16x384xi32>
    %13 = arith.sitofp %12 : vector<16x384xi32> to vector<16x384xf32>
    %14 = arith.addf %8, %13 : vector<16x384xf32>
    %15 = vector.extract_strided_slice %0 {offsets = [0, 2], sizes = [16, 1], strides = [1, 1]} : vector<16x9xi32> to vector<16x1xi32>
    %16 = vector.broadcast %15 : vector<16x1xi32> to vector<16x384xi32>
    %17 = arith.cmpi eq, %1, %16 : vector<16x384xi32>
    %18 = arith.extui %17 : vector<16x384xi1> to vector<16x384xi32>
    %19 = arith.sitofp %18 : vector<16x384xi32> to vector<16x384xf32>
    %20 = arith.addf %14, %19 : vector<16x384xf32>
    %21 = vector.extract_strided_slice %0 {offsets = [0, 3], sizes = [16, 1], strides = [1, 1]} : vector<16x9xi32> to vector<16x1xi32>
    %22 = vector.broadcast %21 : vector<16x1xi32> to vector<16x384xi32>
    %23 = arith.cmpi eq, %1, %22 : vector<16x384xi32>
    %24 = arith.extui %23 : vector<16x384xi1> to vector<16x384xi32>
    %25 = arith.sitofp %24 : vector<16x384xi32> to vector<16x384xf32>
    %26 = arith.addf %20, %25 : vector<16x384xf32>
    %27 = vector.extract_strided_slice %0 {offsets = [0, 4], sizes = [16, 1], strides = [1, 1]} : vector<16x9xi32> to vector<16x1xi32>
    %28 = vector.broadcast %27 : vector<16x1xi32> to vector<16x384xi32>
    %29 = arith.cmpi eq, %1, %28 : vector<16x384xi32>
    %30 = arith.extui %29 : vector<16x384xi1> to vector<16x384xi32>
    %31 = arith.sitofp %30 : vector<16x384xi32> to vector<16x384xf32>
    %32 = arith.addf %26, %31 : vector<16x384xf32>
    %33 = vector.extract_strided_slice %0 {offsets = [0, 5], sizes = [16, 1], strides = [1, 1]} : vector<16x9xi32> to vector<16x1xi32>
    %34 = vector.broadcast %33 : vector<16x1xi32> to vector<16x384xi32>
    %35 = arith.cmpi eq, %1, %34 : vector<16x384xi32>
    %36 = arith.extui %35 : vector<16x384xi1> to vector<16x384xi32>
    %37 = arith.sitofp %36 : vector<16x384xi32> to vector<16x384xf32>
    %38 = arith.addf %32, %37 : vector<16x384xf32>
    %39 = vector.extract_strided_slice %0 {offsets = [0, 6], sizes = [16, 1], strides = [1, 1]} : vector<16x9xi32> to vector<16x1xi32>
    %40 = vector.broadcast %39 : vector<16x1xi32> to vector<16x384xi32>
    %41 = arith.cmpi eq, %1, %40 : vector<16x384xi32>
    %42 = arith.extui %41 : vector<16x384xi1> to vector<16x384xi32>
    %43 = arith.sitofp %42 : vector<16x384xi32> to vector<16x384xf32>
    %44 = arith.addf %38, %43 : vector<16x384xf32>
    %45 = vector.extract_strided_slice %0 {offsets = [0, 7], sizes = [16, 1], strides = [1, 1]} : vector<16x9xi32> to vector<16x1xi32>
    %46 = vector.broadcast %45 : vector<16x1xi32> to vector<16x384xi32>
    %47 = arith.cmpi eq, %1, %46 : vector<16x384xi32>
    %48 = arith.extui %47 : vector<16x384xi1> to vector<16x384xi32>
    %49 = arith.sitofp %48 : vector<16x384xi32> to vector<16x384xf32>
    %50 = arith.addf %44, %49 : vector<16x384xf32>
    %51 = vector.extract_strided_slice %0 {offsets = [0, 8], sizes = [16, 1], strides = [1, 1]} : vector<16x9xi32> to vector<16x1xi32>
    %52 = vector.broadcast %51 : vector<16x1xi32> to vector<16x384xi32>
    %53 = arith.cmpi eq, %1, %52 : vector<16x384xi32>
    %54 = arith.extui %53 : vector<16x384xi1> to vector<16x384xi32>
    %55 = arith.sitofp %54 : vector<16x384xi32> to vector<16x384xf32>
    %56 = arith.addf %50, %55 : vector<16x384xf32>
    %c0_1 = arith.constant 0 : index
    %c0_2 = arith.constant 0 : index
    %57 = vector.load %arg2[%c0_1, %c0_2] : memref<384x128xf32, #tpu.memory_space<vmem>>, vector<384x128xf32>
    %cst_3 = arith.constant dense<0.000000e+00> : vector<16x128xf32>
    %58 = tpu.matmul %56, %57, %cst_3 {dimension_numbers = #tpu.dot_dimension_numbers<[1], [0], [0], [1], [0, 0, 1, 1], [], []>} : vector<16x384xf32>, vector<384x128xf32>, vector<16x128xf32> -> vector<16x128xf32>
    %c0_4 = arith.constant 0 : index
    %c0_5 = arith.constant 0 : index
    %59 = vector.load %arg3[%c0_4, %c0_5] : memref<16x128xf32, #tpu.memory_space<vmem>>, vector<16x128xf32>
    tpu.vector_store %arg3[%c0_4, %c0_5], %58 {strides = array<i32>} : memref<16x128xf32, #tpu.memory_space<vmem>>, vector<16x128xf32>,
    return
  }
  func.func @transform_0(%arg0: i32) -> (i32, i32) {
    %c0_i32 = arith.constant 0 : i32
    %c0_i32_0 = arith.constant 0 : i32
    return %arg0, %c0_i32 : i32, i32
  }
  func.func @transform_1(%arg0: i32) -> (i32, i32) {
    %c0_i32 = arith.constant 0 : i32
    %c0_i32_0 = arith.constant 0 : i32
    %c0_i32_1 = arith.constant 0 : i32
    return %c0_i32, %c0_i32_0 : i32, i32
  }
  func.func @transform_2(%arg0: i32) -> (i32, i32) {
    %c0_i32 = arith.constant 0 : i32
    %c0_i32_0 = arith.constant 0 : i32
    return %arg0, %c0_i32 : i32, i32
  }
}

</mosaic_0001>

<bundles_post_ra>
// kernel: tpu_custom_call.1
= control target key start
LH: loop header
LB: loop body
LE: loop exit
PB: predicated region body
PF: predicated region fallthrough
CT: control target
= control target key end

     0   :  { %7 = vsyncpa [#allocation3], 0  ;;  %s908_s0 = inlined_call_operand.hbm [shape: s32[16,9], index: 0, kind: input, shape index: {}]   ;;  %s909_s1 = inlined_call_operand.hbm [shape: f32[384,128], index: 1, kind: input, shape index: {}]   ;;  %s910_s2 = inlined_call_operand.hbm [shape: f32[16,128], index: 2, kind: output, shape index: {}]  }
   0x1   :  { %8 = vsyncpa [#allocation6], 0 }
   0x2   :  { %9 = vsyncpa [#allocation4], 0  ;;  %s14_s11 = sshll.u32 %s908_s0, 4  ;;  %s639_s12 = smov [#allocation2]   ;;  %s15_s11 = int_to_ptr.hbm [resolvable:$true] %s14_s11 }
   0x3   :  { %s16_s13 = sshll.u32 %s639_s12, 4  ;;  %s27_s16 = sshll.u32 %s909_s1, 4  ;;  %s17_s13 = int_to_ptr.vmem [resolvable:$true] %s16_s13  ;;  %s28_s16 = int_to_ptr.hbm [resolvable:$true] %s27_s16 }
   0x4   :  { %s640_s17 = smov 128   ;;  %s641_s18 = smov 8  }
   0x5   :  { %22 = dma.hbm_to_vmem [thread:$0]  %s15_s11, 256, %s17_s13, [#allocation3], %s640_s17, %s640_s17, %s641_s18  }
   0x6   :  { %s642_s19 = smov [#allocation5]  }
   0x7   :  { %s29_s20 = sshll.u32 %s642_s19, 4  ;;  %s30_s20 = int_to_ptr.vmem [resolvable:$true] %s29_s20 }
   0x8   :  { %35 = dma.hbm_to_vmem [thread:$0]  %s28_s16, 6144, %s30_s20, [#allocation6], %s640_s17, %s640_s17, %s641_s18  }
   0x9   :  { %633 = dma.done.wait [#allocation3], 256  }
   0xa   :  { %634 = vsyncadd [#allocation3], 4294967040 }
   0xb   :  { %635 = dma.done.wait [#allocation6], 6144  }
   0xc   :  { %636 = vsyncadd [#allocation6], 4294961152  ;;  %v643_v0 = vmov 2   ;;  %v644_v1 = vmov 0   ;;  %v44_v2 = vld [vmem:[#allocation2] sm:$0xff]  ;;  %v45_v3 = vld [vmem:[#allocation2 + $0x8] sm:$0xff]  ;;  %v46_v40 = vlaneseq }
   0xd   :  { %546 = vset.pattern.permute.xlu1 %v643_v0  ;;  %544 = vset.pattern.permute.xlu0 %v644_v1  ;;  %v645_v4 = vmov 3   ;;  %v646_v5 = vmov 1   ;;  %v647_v6 = vmov 4   ;;  %v648_v7 = vmov 5   ;;  %v335_v12 = vld [vmem:[#allocation5 + $0x78] sm:$0xff]  ;;  %v334_v15 = vld [vmem:[#allocation5 + $0x70] sm:$0xff] }
   0xe   :  { %548 = vset.pattern.permute.xlu2 %v644_v1  ;;  %111 = vperm.xlu1 %546, %v44_v2   ;;  %v649_v8 = vmov 6   ;;  %v650_v9 = vmov 7   ;;  %v651_v10 = vmov 8   ;;  %v351_v13 = vld [vmem:[#allocation5 + $0xf8] sm:$0xff]  ;;  %v350_v16 = vld [vmem:[#allocation5 + $0xf0] sm:$0xff]  ;;  %v333_v18 = vld [vmem:[#allocation5 + $0x68] sm:$0xff] }
   0xf   :  { %51 = vperm.xlu0 %544, %v44_v2   ;;  %54 = vperm.xlu2 %548, %v45_v3   ;;  %v367_v14 = vld [vmem:[#allocation5 + $0x178] sm:$0xff]  ;;  %v366_v17 = vld [vmem:[#allocation5 + $0x170] sm:$0xff]  ;;  %v349_v19 = vld [vmem:[#allocation5 + $0xe8] sm:$0xff]  ;;  %v689_v46 = vand.u32 127, %v46_v40  ;;  %s653_s0 = smov [#allocation7]   ;;  %s445_s23 = sshll.u32 %s910_s2, 4  ;;  %s446_s23 = int_to_ptr.hbm [resolvable:$true] %s445_s23 }
  0x10   :  { %368 = vmatpush.msra.mxu0 %v335_v12  ;;  %391 = vmatpush.msra.mxu1 %v351_v13  ;;  %v365_v20 = vld [vmem:[#allocation5 + $0x168] sm:$0xff]  ;;  %v332_v21 = vld [vmem:[#allocation5 + $0x60] sm:$0xff]  ;;  %v331_v24 = vld [vmem:[#allocation5 + $0x58] sm:$0xff]  ;;  %s443_s1 = sshll.u32 %s653_s0, 4  ;;  %s444_s1 = int_to_ptr.vmem [resolvable:$true] %s443_s1 }
  0x11   :  { %414 = vmatpush.msra.mxu2 %v367_v14  ;;  %513 = vmatpush.msra.mxu3 %v335_v12  ;;  %v348_v22 = vld [vmem:[#allocation5 + $0xe0] sm:$0xff]  ;;  %v347_v25 = vld [vmem:[#allocation5 + $0xd8] sm:$0xff]  ;;  %v330_v28 = vld [vmem:[#allocation5 + $0x50] sm:$0xff]  ;;  %v696_v55 = vadd.s32 128, %v689_v46  ;;  %v699_v56 = vadd.s32 256, %v689_v46 }
  0x12   :  { %369 = vmatpush.msra.mxu0 %v334_v15  ;;  %392 = vmatpush.msra.mxu1 %v350_v16  ;;  %v364_v23 = vld [vmem:[#allocation5 + $0x160] sm:$0xff]  ;;  %v363_v26 = vld [vmem:[#allocation5 + $0x158] sm:$0xff]  ;;  %v346_v29 = vld [vmem:[#allocation5 + $0xd0] sm:$0xff] }
  0x13   :  { %415 = vmatpush.msra.mxu2 %v366_v17  ;;  %514 = vmatpush.msra.mxu3 %v334_v15  ;;  %v362_v30 = vld [vmem:[#allocation5 + $0x150] sm:$0xff]  ;;  %v329_v31 = vld [vmem:[#allocation5 + $0x48] sm:$0xff]  ;;  %v328_v35 = vld [vmem:[#allocation5 + $0x40] sm:$0xff] }
  0x14   :  { %370 = vmatpush.msra.mxu0 %v333_v18  ;;  %393 = vmatpush.msra.mxu1 %v349_v19  ;;  %v345_v32 = vld [vmem:[#allocation5 + $0xc8] sm:$0xff]  ;;  %v344_v37 = vld [vmem:[#allocation5 + $0xc0] sm:$0xff]  ;;  %v327_v39 = vld [vmem:[#allocation5 + $0x38] sm:$0xff] }
  0x15   :  { %416 = vmatpush.msra.mxu2 %v365_v20  ;;  %515 = vmatpush.msra.mxu3 %v333_v18  ;;  %v361_v33 = vld [vmem:[#allocation5 + $0x148] sm:$0xff]  ;;  %v360_v38 = vld [vmem:[#allocation5 + $0x140] sm:$0xff]  ;;  %v343_v41 = vld [vmem:[#allocation5 + $0xb8] sm:$0xff] }
  0x16   :  { %547 = vset.pattern.permute.xlu1 %v645_v4  ;;  %371 = vmatpush.msra.mxu0 %v332_v21  ;;  %v359_v42 = vld [vmem:[#allocation5 + $0x138] sm:$0xff]  ;;  %v326_v43 = vld [vmem:[#allocation5 + $0x30] sm:$0xff]  ;;  %v325_v48 = vld [vmem:[#allocation5 + $0x28] sm:$0xff] }
  0x17   :  { %545 = vset.pattern.permute.xlu0 %v646_v5  ;;  %141 = vperm.xlu1 %547, %v44_v2   ;;  %v342_v44 = vld [vmem:[#allocation5 + $0xb0] sm:$0xff]  ;;  %v341_v49 = vld [vmem:[#allocation5 + $0xa8] sm:$0xff]  ;;  %v324_v52 = vld [vmem:[#allocation5 + $0x20] sm:$0xff] }
  0x18   :  { %81 = vperm.xlu0 %545, %v44_v2   ;;  %549 = vset.pattern.permute.xlu2 %v646_v5  ;;  %v358_v45 = vld [vmem:[#allocation5 + $0x130] sm:$0xff]  ;;  %v357_v50 = vld [vmem:[#allocation5 + $0x128] sm:$0xff]  ;;  %v340_v53 = vld [vmem:[#allocation5 + $0xa0] sm:$0xff] }
  0x19   :  { %84 = vperm.xlu2 %549, %v45_v3   ;;  %394 = vmatpush.msra.mxu1 %v348_v22  ;;  %v356_v54 = vld [vmem:[#allocation5 + $0x120] sm:$0xff]  ;;  %v323_v58 = vld [vmem:[#allocation5 + $0x18] sm:$0xff]  ;;  %v322_v61 = vld [vmem:[#allocation5 + $0x10] sm:$0xff] }
  0x1a   :  { %417 = vmatpush.msra.mxu2 %v364_v23  ;;  %516 = vmatpush.msra.mxu3 %v332_v21  ;;  %v339_v59 = vld [vmem:[#allocation5 + $0x98] sm:$0xff]  ;;  %v338_v62 = vld [vmem:[#allocation5 + $0x90] sm:$0xff]  ;;  %v320_v12 = vld [vmem:[#allocation5] sm:$0xff] }
  0x1b   :  { %372 = vmatpush.msra.mxu0 %v331_v24  ;;  %395 = vmatpush.msra.mxu1 %v347_v25  ;;  %v355_v60 = vld [vmem:[#allocation5 + $0x118] sm:$0xff]  ;;  %v354_v63 = vld [vmem:[#allocation5 + $0x110] sm:$0xff]  ;;  %v336_v13 = vld [vmem:[#allocation5 + $0x80] sm:$0xff] }
  0x1c   :  { %418 = vmatpush.msra.mxu2 %v363_v26  ;;  %517 = vmatpush.msra.mxu3 %v331_v24  ;;  %v352_v18 = vld [vmem:[#allocation5 + $0x100] sm:$0xff] }
  0x1d   :  { %373 = vmatpush.msra.mxu0 %v330_v28  ;;  %396 = vmatpush.msra.mxu1 %v346_v29 }
  0x1e   :  { %419 = vmatpush.msra.mxu2 %v362_v30  ;;  %518 = vmatpush.msra.mxu3 %v330_v28 }
  0x1f   :  { %550 = vset.pattern.permute.xlu1 %v647_v6  ;;  %374 = vmatpush.msra.mxu0 %v329_v31 }
  0x20   :  { %552 = vset.pattern.permute.xlu0 %v648_v7  ;;  %171 = vperm.xlu1 %550, %v44_v2   ;;  %v353_v7 = vld [vmem:[#allocation5 + $0x108] sm:$0xff] }
  0x21   :  { %201 = vperm.xlu0 %552, %v44_v2   ;;  %551 = vset.pattern.permute.xlu2 %v643_v0  ;;  %v652_v0 = vmov 0.0  }
  0x22   :  { %114 = vperm.xlu2 %551, %v45_v3   ;;  %397 = vmatpush.msra.mxu1 %v345_v32 }
  0x23   :  { %420 = vmatpush.msra.mxu2 %v361_v33  ;;  %375 = vmatpush.msra.mxu0 %v328_v35 }
  0x24   :  { %519 = vmatpush.msra.mxu3 %v329_v31  ;;  %398 = vmatpush.msra.mxu1 %v344_v37 }
  0x25   :  { %421 = vmatpush.msra.mxu2 %v360_v38  ;;  %376 = vmatpush.msra.mxu0 %v327_v39 }
  0x26   :  { %520 = vmatpush.msra.mxu3 %v328_v35  ;;  %399 = vmatpush.msra.mxu1 %v343_v41 }
  0x27   :  { %422 = vmatpush.msra.mxu2 %v359_v42  ;;  %377 = vmatpush.msra.mxu0 %v326_v43 }
  0x28   :  { %553 = vset.pattern.permute.xlu1 %v645_v4  ;;  %521 = vmatpush.msra.mxu3 %v327_v39  ;;  %v337_v4 = vld [vmem:[#allocation5 + $0x88] sm:$0xff] }
  0x29   :  { %204 = vperm.xlu0 %552, %v45_v3   ;;  %144 = vperm.xlu1 %553, %v45_v3  }
  0x2a   :  { %554 = vset.pattern.permute.xlu2 %v649_v8  ;;  %400 = vmatpush.msra.mxu1 %v342_v44 }
  0x2b   :  { %231 = vperm.xlu2 %554, %v44_v2   ;;  %423 = vmatpush.msra.mxu2 %v358_v45 }
  0x2c   :  { %378 = vmatpush.msra.mxu0 %v325_v48  ;;  %522 = vmatpush.msra.mxu3 %v326_v43 }
  0x2d   :  { %401 = vmatpush.msra.mxu1 %v341_v49  ;;  %424 = vmatpush.msra.mxu2 %v357_v50 }
  0x2e   :  { %379 = vmatpush.msra.mxu0 %v324_v52  ;;  %523 = vmatpush.msra.mxu3 %v325_v48 }
  0x2f   :  { %402 = vmatpush.msra.mxu1 %v340_v53  ;;  %425 = vmatpush.msra.mxu2 %v356_v54 }
  0x30   :  { %380 = vmatpush.msra.mxu0 %v323_v58  ;;  %524 = vmatpush.msra.mxu3 %v324_v52 }
  0x31   :  { %559 = vset.pattern.permute.xlu0 %v650_v9  ;;  %555 = vset.pattern.permute.xlu1 %v647_v6 }
  0x32   :  { %264 = vperm.xlu0 %559, %v45_v3   ;;  %174 = vperm.xlu1 %555, %v45_v3  }
  0x33   :  { %556 = vset.pattern.permute.xlu2 %v650_v9  ;;  %403 = vmatpush.msra.mxu1 %v339_v59 }
  0x34   :  { %261 = vperm.xlu2 %556, %v44_v2   ;;  %426 = vmatpush.msra.mxu2 %v355_v60 }
  0x35   :  { %381 = vmatpush.msra.mxu0 %v322_v61  ;;  %404 = vmatpush.msra.mxu1 %v338_v62 }
  0x36   :  { %427 = vmatpush.msra.mxu2 %v354_v63  ;;  %525 = vmatpush.msra.mxu3 %v323_v58 }
  0x37   :  { %405 = vmatpush.msra.mxu1 %v337_v4 }
  0x38   :  { %428 = vmatpush.msra.mxu2 %v353_v7  ;;  %526 = vmatpush.msra.mxu3 %v322_v61 }
  0x39   :  { %406 = vmatpush.msra.mxu1 %v336_v13 }
  0x3a   :  { %560 = vset.pattern.permute.xlu0 %v651_v10  ;;  %557 = vset.pattern.permute.xlu1 %v651_v10 }
  0x3b   :  { %291 = vperm.xlu1 %557, %v44_v2   ;;  %429 = vmatpush.msra.mxu2 %v352_v18 }
  0x3c   :  { %558 = vset.pattern.permute.xlu2 %v649_v8 }
  0x3d   :  { %234 = vperm.xlu2 %558, %v45_v3  }
  0x43   :  { %294 = vperm.xlu1 %557, %v45_v3   ;;  %v321_v3 = vld [vmem:[#allocation5 + $0x8] sm:$0xff] }
  0x44   :  { %382 = vmatpush.msra.mxu0 %v321_v3  ;;  %527 = vmatpush.msra.mxu3 %v321_v3 }
  0x46   :  { %383 = vmatpush.msra.mxu0 %v320_v12  ;;  %528 = vmatpush.msra.mxu3 %v320_v12 }
  0x69   :  { %v681_v11 = vpop.permute.xlu2 %54 }
  0x6a   :  { %vm59_vm0 = vcmp.eq.s32.totalorder %v689_v46, %v681_v11  ;;  %vm60_vm1 = vcmp.eq.s32.totalorder %v696_v55, %v681_v11  ;;  %vm61_vm2 = vcmp.eq.s32.totalorder %v699_v56, %v681_v11 }
  0x6b   :  { %v462_v1 = vsel %vm59_vm0, 1.0, %v652_v0  ;;  %v463_v5 = vsel %vm60_vm1, 1.0, %v652_v0  ;;  %v464_v6 = vsel %vm61_vm2, 1.0, %v652_v0 }
  0x73   :  { %v683_v27 = vpop.permute.xlu2 %84 }
  0x74   :  { %vm89_vm3 = vcmp.eq.s32.totalorder %v689_v46, %v683_v27  ;;  %vm90_vm4 = vcmp.eq.s32.totalorder %v696_v55, %v683_v27  ;;  %vm91_vm7 = vcmp.eq.s32.totalorder %v699_v56, %v683_v27 }
  0x75   :  { %v468_v8 = vsel %vm89_vm3, 1.0, %v652_v0  ;;  %v469_v9 = vsel %vm90_vm4, 1.0, %v652_v0  ;;  %v470_v14 = vsel %vm91_vm7, 1.0, %v652_v0 }
  0x76   :  { %v107_v22 = vadd.f32 %v468_v8, %v462_v1  ;;  %v108_v24 = vadd.f32 %v469_v9, %v463_v5  ;;  %v109_v25 = vadd.f32 %v470_v14, %v464_v6 }
  0x7c   :  { %v691_v47 = vpop.permute.xlu2 %114 }
  0x7d   :  { %vm119_vm12 = vcmp.eq.s32.totalorder %v689_v46, %v691_v47  ;;  %vm120_vm13 = vcmp.eq.s32.totalorder %v696_v55, %v691_v47  ;;  %vm121_vm14 = vcmp.eq.s32.totalorder %v699_v56, %v691_v47 }
  0x7e   :  { %v474_v26 = vsel %vm119_vm12, 1.0, %v652_v0  ;;  %v475_v30 = vsel %vm120_vm13, 1.0, %v652_v0  ;;  %v476_v31 = vsel %vm121_vm14, 1.0, %v652_v0 }
  0x7f   :  { %v137_v37 = vadd.f32 %v474_v26, %v107_v22  ;;  %v138_v39 = vadd.f32 %v475_v30, %v108_v24  ;;  %v139_v40 = vadd.f32 %v476_v31, %v109_v25 }
  0x80   :  { %v685_v34 = vpop.permute.xlu1 %111 }
  0x81   :  { %v687_v36 = vpop.permute.xlu0 %51  ;;  %vm116_vm15 = vcmp.eq.s32.totalorder %v689_v46, %v685_v34  ;;  %vm117_vm0 = vcmp.eq.s32.totalorder %v696_v55, %v685_v34  ;;  %vm118_vm1 = vcmp.eq.s32.totalorder %v699_v56, %v685_v34 }
  0x82   :  { %vm56_vm5 = vcmp.eq.s32.totalorder %v689_v46, %v687_v36  ;;  %vm57_vm8 = vcmp.eq.s32.totalorder %v696_v55, %v687_v36  ;;  %vm58_vm10 = vcmp.eq.s32.totalorder %v699_v56, %v687_v36  ;;  %v471_v28 = vsel %vm116_vm15, 1.0, %v652_v0 }
  0x83   :  { %v459_v10 = vsel %vm56_vm5, 1.0, %v652_v0  ;;  %v460_v15 = vsel %vm57_vm8, 1.0, %v652_v0  ;;  %v461_v19 = vsel %vm58_vm10, 1.0, %v652_v0  ;;  %v472_v29 = vsel %vm117_vm0, 1.0, %v652_v0 }
  0x84   :  { %v473_v32 = vsel %vm118_vm1, 1.0, %v652_v0 }
  0x85   :  { %v723_v2 = vpop.permute.xlu2 %231 }
  0x86   :  { %vm236_vm10 = vcmp.eq.s32.totalorder %v689_v46, %v723_v2  ;;  %vm238_vm13 = vcmp.eq.s32.totalorder %v699_v56, %v723_v2 }
  0x87   :  { %v495_v60 = vsel %vm236_vm10, 1.0, %v652_v0  ;;  %v497_v1 = vsel %vm238_vm13, 1.0, %v652_v0 }
  0x89   :  { %v693_v51 = vpop.permute.xlu1 %141 }
  0x8a   :  { %v82_v57 = vpop.permute.xlu0 %81  ;;  %vm146_vm2 = vcmp.eq.s32.totalorder %v689_v46, %v693_v51  ;;  %vm147_vm3 = vcmp.eq.s32.totalorder %v696_v55, %v693_v51  ;;  %vm148_vm4 = vcmp.eq.s32.totalorder %v699_v56, %v693_v51 }
  0x8b   :  { %vm86_vm6 = vcmp.eq.s32.totalorder %v689_v46, %v82_v57  ;;  %vm87_vm9 = vcmp.eq.s32.totalorder %v696_v55, %v82_v57  ;;  %vm88_vm11 = vcmp.eq.s32.totalorder %v699_v56, %v82_v57  ;;  %v477_v41 = vsel %vm146_vm2, 1.0, %v652_v0 }
  0x8c   :  { %v465_v11 = vsel %vm86_vm6, 1.0, %v652_v0  ;;  %v466_v16 = vsel %vm87_vm9, 1.0, %v652_v0  ;;  %v467_v20 = vsel %vm88_vm11, 1.0, %v652_v0  ;;  %v478_v42 = vsel %vm147_vm3, 1.0, %v652_v0 }
  0x8d   :  { %v104_v21 = vadd.f32 %v465_v11, %v459_v10  ;;  %v105_v23 = vadd.f32 %v466_v16, %v460_v15  ;;  %v106_v27 = vadd.f32 %v467_v20, %v461_v19  ;;  %v479_v44 = vsel %vm148_vm4, 1.0, %v652_v0 }
  0x8e   :  { %v804_v36 = vpop.permute.xlu2 %261  ;;  %vm237_vm11 = vcmp.eq.s32.totalorder %v696_v55, %v723_v2 }
  0x8f   :  { %v134_v33 = vadd.f32 %v471_v28, %v104_v21  ;;  %v135_v35 = vadd.f32 %v472_v29, %v105_v23  ;;  %v136_v38 = vadd.f32 %v473_v32, %v106_v27  ;;  %vm266_vm14 = vcmp.eq.s32.totalorder %v689_v46, %v804_v36 }
  0x90   :  { %vm267_vm15 = vcmp.eq.s32.totalorder %v696_v55, %v804_v36  ;;  %v496_v63 = vsel %vm237_vm11, 1.0, %v652_v0  ;;  %vm268_vm2 = vcmp.eq.s32.totalorder %v699_v56, %v804_v36  ;;  %v501_v5 = vsel %vm266_vm14, 1.0, %v652_v0 }
  0x91   :  { %v164_v45 = vadd.f32 %v477_v41, %v134_v33  ;;  %v165_v49 = vadd.f32 %v478_v42, %v135_v35  ;;  %v166_v51 = vadd.f32 %v479_v44, %v136_v38  ;;  %v502_v6 = vsel %vm267_vm15, 1.0, %v652_v0 }
  0x92   :  { %v172_v17 = vpop.permute.xlu1 %171  ;;  %v503_v24 = vsel %vm268_vm2, 1.0, %v652_v0 }
  0x93   :  { %v202_v34 = vpop.permute.xlu0 %201  ;;  %vm176_vm5 = vcmp.eq.s32.totalorder %v689_v46, %v172_v17  ;;  %vm177_vm6 = vcmp.eq.s32.totalorder %v696_v55, %v172_v17  ;;  %vm178_vm7 = vcmp.eq.s32.totalorder %v699_v56, %v172_v17 }
  0x94   :  { %v483_v47 = vsel %vm176_vm5, 1.0, %v652_v0  ;;  %v484_v48 = vsel %vm177_vm6, 1.0, %v652_v0  ;;  %v485_v50 = vsel %vm178_vm7, 1.0, %v652_v0  ;;  %vm206_vm8 = vcmp.eq.s32.totalorder %v689_v46, %v202_v34 }
  0x95   :  { %vm207_vm9 = vcmp.eq.s32.totalorder %v696_v55, %v202_v34  ;;  %vm208_vm12 = vcmp.eq.s32.totalorder %v699_v56, %v202_v34  ;;  %v194_v52 = vadd.f32 %v483_v47, %v164_v45  ;;  %v195_v53 = vadd.f32 %v484_v48, %v165_v49 }
  0x96   :  { %v196_v54 = vadd.f32 %v485_v50, %v166_v51  ;;  %v489_v57 = vsel %vm206_vm8, 1.0, %v652_v0  ;;  %v490_v58 = vsel %vm207_vm9, 1.0, %v652_v0  ;;  %v491_v61 = vsel %vm208_vm12, 1.0, %v652_v0 }
  0x97   :  { %v235_v62 = vpop.permute.xlu2 %234  ;;  %v224_v3 = vadd.f32 %v489_v57, %v194_v52  ;;  %v225_v4 = vadd.f32 %v490_v58, %v195_v53 }
  0x98   :  { %v226_v7 = vadd.f32 %v491_v61, %v196_v54  ;;  %vm239_vm4 = vcmp.eq.s32.totalorder %v689_v46, %v235_v62  ;;  %vm240_vm8 = vcmp.eq.s32.totalorder %v696_v55, %v235_v62  ;;  %vm241_vm9 = vcmp.eq.s32.totalorder %v699_v56, %v235_v62 }
  0x99   :  { %v254_v16 = vadd.f32 %v495_v60, %v224_v3  ;;  %v255_v18 = vadd.f32 %v496_v63, %v225_v4  ;;  %v498_v25 = vsel %vm239_vm4, 1.0, %v652_v0  ;;  %v499_v26 = vsel %vm240_vm8, 1.0, %v652_v0 }
  0x9a   :  { %v256_v19 = vadd.f32 %v497_v1, %v226_v7  ;;  %v500_v27 = vsel %vm241_vm9, 1.0, %v652_v0 }
  0x9b   :  { %v145_v43 = vpop.permute.xlu1 %144  ;;  %v205_v59 = vpop.permute.xlu0 %204  ;;  %v284_v28 = vadd.f32 %v501_v5, %v254_v16  ;;  %v285_v32 = vadd.f32 %v502_v6, %v255_v18 }
  0x9c   :  { %vm149_vm0 = vcmp.eq.s32.totalorder %v689_v46, %v145_v43  ;;  %vm150_vm1 = vcmp.eq.s32.totalorder %v696_v55, %v145_v43  ;;  %vm151_vm3 = vcmp.eq.s32.totalorder %v699_v56, %v145_v43  ;;  %vm209_vm10 = vcmp.eq.s32.totalorder %v689_v46, %v205_v59 }
  0x9d   :  { %v480_v2 = vsel %vm149_vm0, 1.0, %v652_v0  ;;  %v481_v8 = vsel %vm150_vm1, 1.0, %v652_v0  ;;  %v482_v10 = vsel %vm151_vm3, 1.0, %v652_v0  ;;  %vm210_vm11 = vcmp.eq.s32.totalorder %v696_v55, %v205_v59 }
  0x9e   :  { %v167_v13 = vadd.f32 %v480_v2, %v137_v37  ;;  %v168_v14 = vadd.f32 %v481_v8, %v138_v39  ;;  %v169_v17 = vadd.f32 %v482_v10, %v139_v40  ;;  %vm211_vm12 = vcmp.eq.s32.totalorder %v699_v56, %v205_v59 }
  0x9f   :  { %v492_v29 = vsel %vm209_vm10, 1.0, %v652_v0  ;;  %v493_v30 = vsel %vm210_vm11, 1.0, %v652_v0  ;;  %v494_v31 = vsel %vm211_vm12, 1.0, %v652_v0  ;;  %v286_v36 = vadd.f32 %v503_v24, %v256_v19 }
  0xa4   :  { %v175_v9 = vpop.permute.xlu1 %174  ;;  %v265_v23 = vpop.permute.xlu0 %264 }
  0xa5   :  { %vm179_vm5 = vcmp.eq.s32.totalorder %v689_v46, %v175_v9  ;;  %vm180_vm6 = vcmp.eq.s32.totalorder %v696_v55, %v175_v9  ;;  %vm181_vm7 = vcmp.eq.s32.totalorder %v699_v56, %v175_v9  ;;  %vm269_vm13 = vcmp.eq.s32.totalorder %v689_v46, %v265_v23 }
  0xa6   :  { %v486_v11 = vsel %vm179_vm5, 1.0, %v652_v0  ;;  %v487_v12 = vsel %vm180_vm6, 1.0, %v652_v0  ;;  %v488_v15 = vsel %vm181_vm7, 1.0, %v652_v0  ;;  %vm270_vm1 = vcmp.eq.s32.totalorder %v696_v55, %v265_v23 }
  0xa7   :  { %v197_v20 = vadd.f32 %v486_v11, %v167_v13  ;;  %v198_v21 = vadd.f32 %v487_v12, %v168_v14  ;;  %v199_v22 = vadd.f32 %v488_v15, %v169_v17  ;;  %vm271_vm2 = vcmp.eq.s32.totalorder %v699_v56, %v265_v23 }
  0xa8   :  { %v504_v48 = vsel %vm269_vm13, 1.0, %v652_v0  ;;  %v505_v49 = vsel %vm270_vm1, 1.0, %v652_v0  ;;  %v506_v50 = vsel %vm271_vm2, 1.0, %v652_v0 }
  0xa9   :  { %v227_v33 = vadd.f32 %v492_v29, %v197_v20  ;;  %v228_v34 = vadd.f32 %v493_v30, %v198_v21  ;;  %v229_v37 = vadd.f32 %v494_v31, %v199_v22 }
  0xab   :  { %v257_v44 = vadd.f32 %v498_v25, %v227_v33  ;;  %v258_v45 = vadd.f32 %v499_v26, %v228_v34  ;;  %v259_v47 = vadd.f32 %v500_v27, %v229_v37 }
  0xad   :  { %v292_v35 = vpop.permute.xlu1 %291  ;;  %v287_v52 = vadd.f32 %v504_v48, %v257_v44  ;;  %v288_v53 = vadd.f32 %v505_v49, %v258_v45  ;;  %v289_v54 = vadd.f32 %v506_v50, %v259_v47 }
  0xae   :  { %vm296_vm14 = vcmp.eq.s32.totalorder %v689_v46, %v292_v35  ;;  %vm297_vm15 = vcmp.eq.s32.totalorder %v696_v55, %v292_v35  ;;  %vm298_vm0 = vcmp.eq.s32.totalorder %v699_v56, %v292_v35 }
  0xaf   :  { %v507_v38 = vsel %vm296_vm14, 1.0, %v652_v0  ;;  %v508_v39 = vsel %vm297_vm15, 1.0, %v652_v0  ;;  %v509_v40 = vsel %vm298_vm0, 1.0, %v652_v0 }
  0xb0   :  { %v314_v41 = vadd.f32 %v507_v38, %v284_v28  ;;  %v315_v42 = vadd.f32 %v508_v39, %v285_v32  ;;  %v316_v43 = vadd.f32 %v509_v40, %v286_v36 }
  0xb2   :  { %384 = vmatmul.f32.vlgmr.msra.gmra.mxu0 %v314_v41  ;;  %407 = vmatmul.f32.vlgmr.msra.gmra.mxu1 %v315_v42 }
  0xb3   :  { %430 = vmatmul.f32.vlgmr.msra.gmra.mxu2 %v316_v43 }
  0xb5   :  { %v295_v51 = vpop.permute.xlu1 %294 }
  0xb6   :  { %vm299_vm3 = vcmp.eq.s32.totalorder %v689_v46, %v295_v51  ;;  %vm300_vm4 = vcmp.eq.s32.totalorder %v696_v55, %v295_v51  ;;  %vm301_vm5 = vcmp.eq.s32.totalorder %v699_v56, %v295_v51 }
  0xb7   :  { %v510_v57 = vsel %vm299_vm3, 1.0, %v652_v0  ;;  %v511_v58 = vsel %vm300_vm4, 1.0, %v652_v0  ;;  %v512_v59 = vsel %vm301_vm5, 1.0, %v652_v0 }
  0xb8   :  { %v317_v60 = vadd.f32 %v510_v57, %v287_v52  ;;  %v318_v61 = vadd.f32 %v511_v58, %v288_v53  ;;  %v319_v62 = vadd.f32 %v512_v59, %v289_v54 }
  0xba   :  { %387 = vmatmul.f32.vlgmr.msra.gmra.mxu3 %v317_v60  ;;  %410 = vmatmul.f32.gmra.mxu1 %v318_v61 }
  0xbb   :  { %433 = vmatmul.f32.gmra.mxu2 %v319_v62 }
 0x12f   :  { %v385_v63 = vpop.f32.mrf.mxu0  ;;  %v408_v1 = vpop.f32.mrf.mxu1 }
 0x130   :  { %v409_v46 = vadd.f32 %v408_v1, %v385_v63 }
 0x136   :  { %v431_v3 = vpop.f32.mrf.mxu2 }
 0x137   :  { %v432_v55 = vadd.f32 %v431_v3, %v409_v46  ;;  %v411_v56 = vpop.f32.mrf.mxu1 }
 0x139   :  { %437 = vst [vmem:[#allocation7] sm:$0xff] %v432_v55 }
 0x13d   :  { %v388_v4 = vpop.f32.mrf.mxu3 }
 0x13e   :  { %v412_v0 = vadd.f32 %v411_v56, %v388_v4  ;;  %v434_v5 = vpop.f32.mrf.mxu2 }
 0x140   :  { %v435_v6 = vadd.f32 %v434_v5, %v412_v0 }
 0x142   :  { %438 = vst [vmem:[#allocation7 + $0x8] sm:$0xff] %v435_v6 }
 0x143   :  { %451 = dma.vmem_to_hbm [thread:$0]  %s444_s1, 256, %s446_s23, [#allocation4], %s640_s17, %s640_s17, %s641_s18  }
 0x144   :  { %637 = dma.done.wait [#allocation4], 256  }
 0x145   :  { %638 = vsyncadd [#allocation4], 4294967040 }
 0x146   :  { %456 = vsyncpa [#allocation3], 1 }
 0x147   :  { %457 = vsyncpa [#allocation6], 1 }
 0x148   :  { %458 = vsyncpa [#allocation4], 1 }

</bundles_post_ra>
